<compile_context>
chip_gen: v5e
topology: v5e:2x2
jax: 0.10.0
libtpu: 0.0.40
codegen_flags: <defaults>
</compile_context>

<pallas_src>
import functools

import jax
import jax.numpy as jnp
from jax.experimental import pallas as pl
from jax.experimental.pallas import tpu as pltpu

LANE = 128      # vreg lane width  (last dim)
SUBLANE = 8     # vreg sublane width (second-last dim)
MIB = 1024 * 1024


def _round_up(n, m):
    return (n + m - 1) // m * m


def _cdiv(a, b):
    return -(-a // b)


def _is_f32(dt):
    return jnp.dtype(dt) == jnp.dtype(jnp.float32)


def _dot_precision(dot_dtype):
    # Exact-parity mode needs HIGHEST; bf16 operands use the MXU-native path.
    return jax.lax.Precision.HIGHEST if _is_f32(dot_dtype) else None


def _supports_single_buffer():
    if not hasattr(pl, "Buffered"):
        return False
    try:
        pl.BlockSpec((SUBLANE, LANE), lambda i: (0, 0), pipeline_mode=pl.Buffered(1))
        return True
    except TypeError:
        return False


_SINGLE_BUFFER_WEIGHTS = _supports_single_buffer()


def _resident_spec(shape):
    """Constant-index (VMEM-resident) spec; single-buffered when supported."""
    if _SINGLE_BUFFER_WEIGHTS:
        return pl.BlockSpec(shape, lambda i: (0, 0), pipeline_mode=pl.Buffered(1))
    return pl.BlockSpec(shape, lambda i: (0, 0))


def _vmem_budget_bytes():
    """Per-generation scoped-VMEM budget (v5e/v6e: 128 MiB phys -> ~100 MiB;
    v7x: 64 MiB/TC -> ~56 MiB)."""
    cap = 128 * MIB
    try:
        cap = int(getattr(pltpu.get_tpu_info(), "vmem_capacity_bytes", cap))
    except Exception:
        pass
    return 100 * MIB if cap >= 100 * MIB else 56 * MIB


def _pick_batch_tile(B, *, block_rows=512, mxu_m=128):
    """MXU-M aligned batch tile that minimizes padding; >=2 tiles when there
    is enough work so the 'parallel' axis shards across v7x's two cores."""
    b8 = _round_up(B, SUBLANE)
    if b8 <= mxu_m:
        return b8                                   # tiny batch: one small tile
    n_tiles = max(2, _cdiv(b8, block_rows))
    tb = _round_up(_cdiv(b8, n_tiles), mxu_m)
    return min(tb, _round_up(block_rows, mxu_m))


def _pick_tile(dim, cap):
    for t in (512, 384, 256, 128):
        if t <= cap and dim % t == 0:
            return t
    return min(dim, cap)


# ----------------------------------------------------------------------------
# Fused (weights fully VMEM-resident) path
# ----------------------------------------------------------------------------
def _make_fused_kernel(n_layers, dot_dtype, precision):
    """Kernel over one [tb, cin] batch tile; all weights VMEM-resident."""

    def kernel(x_ref, *refs):
        o_ref = refs[-1]
        wb = refs[:-1]                       # w0, b0, ..., w_{n-1}, b_{n-1}, wo, bo

        h = x_ref[...]                       # [tb, cin] f32
        for i in range(n_layers):
            w_ref, b_ref = wb[2 * i], wb[2 * i + 1]
            # bf16 (or f32-exact) MXU dot, f32 accumulate, f32 bias/ReLU on VPU.
            h = jnp.dot(h.astype(dot_dtype), w_ref[...],
                        preferred_element_type=jnp.float32,
                        precision=precision) + b_ref[...]
            h = jnp.maximum(h, 0.0)

        wo_ref, bo_ref = wb[-2], wb[-1]
        y = jnp.dot(h.astype(dot_dtype), wo_ref[...],
                    preferred_element_type=jnp.float32,
                    precision=precision) + bo_ref[...]
        o_ref[...] = y.astype(o_ref.dtype)

    return kernel


# ----------------------------------------------------------------------------
# Tiled fallback path (used when resident weights exceed the VMEM budget,
# e.g. very wide MLPs on v7x's 64 MiB VMEM)
# ----------------------------------------------------------------------------
def _linear_kernel(x_ref, w_ref, b_ref, o_ref, acc_ref, *, relu, precision):
    k = pl.program_id(2)

    @pl.when(k == 0)
    def _():
        acc_ref[...] = jnp.zeros_like(acc_ref)

    acc_ref[...] += jnp.dot(x_ref[...], w_ref[...],
                            preferred_element_type=jnp.float32,
                            precision=precision)

    @pl.when(k == pl.num_programs(2) - 1)
    def _():
        y = acc_ref[...] + b_ref[...]
        if relu:
            y = jnp.maximum(y, 0.0)
        o_ref[...] = y.astype(o_ref.dtype)


def _linear_tiled(x, w, b, *, relu, out_dtype, precision, tm):
    M, K = x.shape
    _, N = w.shape
    tm = min(tm, M)
    tk = _pick_tile(K, 512)
    tn = _pick_tile(N, 512)
    grid = (M // tm, N // tn, K // tk)
    return pl.pallas_call(
        functools.partial(_linear_kernel, relu=relu, precision=precision),
        out_shape=jax.ShapeDtypeStruct((M, N), out_dtype),
        grid=grid,
        in_specs=[pl.BlockSpec((tm, tk), lambda i, j, k: (i, k)),
                  pl.BlockSpec((tk, tn), lambda i, j, k: (k, j)),
                  pl.BlockSpec((1, tn), lambda i, j, k: (0, j))],
        out_specs=pl.BlockSpec((tm, tn), lambda i, j, k: (i, j)),
        scratch_shapes=[pltpu.VMEM((tm, tn), jnp.float32)],
        compiler_params=pltpu.CompilerParams(
            dimension_semantics=("parallel", "parallel", "arbitrary"),
            vmem_limit_bytes=_vmem_budget_bytes()),
    )(x, w, b)


def _mlp_forward_tiled(x, prepped):
    """Layer-by-layer K/N-tiled path with an f32 VMEM accumulator."""
    B, cin = x.shape
    cin_p, cout_p, cout = prepped["cin_p"], prepped["cout_p"], prepped["cout"]
    n_layers = prepped["n_layers"]
    dot_dtype = prepped["dot_dtype"]
    precision = _dot_precision(dot_dtype)

    tm = _pick_batch_tile(B, block_rows=256)
    b_pad = tm * _cdiv(B, tm)

    h = x
    if (b_pad, cin_p) != (B, cin):
        h = jnp.pad(x, ((0, b_pad - B), (0, cin_p - cin)))
    h = h.astype(dot_dtype)

    def _full_k(w):          # pad the first matmul's K dim up to cin_p
        k = w.shape[0]
        return w if k == cin_p else jnp.pad(w, ((0, cin_p - k), (0, 0)))

    for i in range(n_layers):
        h = _linear_tiled(h, _full_k(prepped[f"w{i}"]), prepped[f"b{i}"],
                          relu=True, out_dtype=dot_dtype,
                          precision=precision, tm=tm)
    y = _linear_tiled(h, _full_k(prepped["wo"]), prepped["bo"],
                      relu=False, out_dtype=jnp.float32,
                      precision=precision, tm=tm)
    return y[:B, :cout]


# ----------------------------------------------------------------------------
# Parameter prep and public forward
# ----------------------------------------------------------------------------
def prepare_params(params, n_layers=2, *, dot_dtype=jnp.bfloat16):
    """One-time parameter prep (call once, NOT per forward):
       transpose PyTorch [out,in] -> [in,out], zero-pad feature dims to 128,
       reshape biases to [1, C_pad], cast dot operands to `dot_dtype`
       (bf16 default -> MXU-native on v5e/v6e/v7x; use jnp.float32 for an
       exact-parity mode)."""
    cin = int(params["lin0_w"].shape[1]) if n_layers > 0 else int(params["out_w"].shape[1])
    cout = int(params["out_w"].shape[0])
    cin_p = _round_up(cin, LANE)
    cout_p = _round_up(cout, LANE)

    prepped = {"cin": cin, "cout": cout, "cin_p": cin_p, "cout_p": cout_p,
               "n_layers": n_layers, "dot_dtype": dot_dtype}

    for i in range(n_layers):
        w = params[f"lin{i}_w"]
        assert w.shape == (cin, cin), f"hidden layer {i}: expected ({cin},{cin}), got {w.shape}"
        wt = w.T
        if i == 0:
            # Keep the K dim unpadded so x needs no feature-dim padding pass.
            prepped["w0"] = jnp.pad(wt, ((0, 0), (0, cin_p - cin))).astype(dot_dtype)
        else:
            prepped[f"w{i}"] = jnp.pad(
                wt, ((0, cin_p - cin), (0, cin_p - cin))).astype(dot_dtype)
        prepped[f"b{i}"] = jnp.pad(params[f"lin{i}_b"],
                                   (0, cin_p - cin)).reshape(1, cin_p).astype(jnp.float32)

    wo = params["out_w"].T                           # (cin, cout)
    wo_rows = cin if n_layers == 0 else cin_p
    prepped["wo"] = jnp.pad(wo, ((0, wo_rows - cin),
                                 (0, cout_p - cout))).astype(dot_dtype)
    prepped["bo"] = jnp.pad(params["out_b"],
                            (0, cout_p - cout)).reshape(1, cout_p).astype(jnp.float32)
    return prepped


def mlp_forward(x, prepped, *, block_rows=512):
    """x: [B, in_channels] f32. prepped: output of prepare_params."""
    B, cin = x.shape
    assert cin == prepped["cin"], "feature dim mismatch"
    cin_p, cout_p, cout = prepped["cin_p"], prepped["cout_p"], prepped["cout"]
    n_layers = prepped["n_layers"]
    dot_dtype = prepped["dot_dtype"]
    precision = _dot_precision(dot_dtype)

    tb = _pick_batch_tile(B, block_rows=block_rows)
    b_pad = tb * _cdiv(B, tb)

    # VMEM budget check (resident weights + pipelined activation tiles).
    weight_keys = [f"w{i}" for i in range(n_layers)] + [f"b{i}" for i in range(n_layers)] \
                  + ["wo", "bo"]
    weight_bytes = sum(int(prepped[k].size) * prepped[k].dtype.itemsize for k in weight_keys)
    wmult = 1 if _SINGLE_BUFFER_WEIGHTS else 2
    act_bytes = 2 * (tb * cin * 4 + tb * cout_p * 4)        # double-buffered I/O tiles
    tmp_bytes = 3 * tb * cin_p * 4                          # in-kernel temporaries
    needed = wmult * weight_bytes + act_bytes + tmp_bytes + 2 * MIB
    budget = _vmem_budget_bytes()

    if needed > budget:
        # Weight set too large to keep resident (e.g. wide MLP on v7x's 64 MiB):
        # fall back to the K/N-tiled per-layer path.
        return _mlp_forward_tiled(x, prepped)

    x_in = x if b_pad == B else jnp.pad(x, ((0, b_pad - B), (0, 0)))

    in_specs = [pl.BlockSpec((tb, cin), lambda i: (i, 0))]
    args = [x_in]
    for i in range(n_layers):
        w, b = prepped[f"w{i}"], prepped[f"b{i}"]
        in_specs += [_resident_spec(w.shape), _resident_spec(b.shape)]
        args += [w, b]
    in_specs += [_resident_spec(prepped["wo"].shape), _resident_spec(prepped["bo"].shape)]
    args += [prepped["wo"], prepped["bo"]]

    flops = 2 * b_pad * (cin * cin_p
                         + max(n_layers - 1, 0) * cin_p * cin_p
                         + cin_p * cout_p)
    bytes_accessed = b_pad * cin * 4 + b_pad * cout_p * 4 + weight_bytes

    out = pl.pallas_call(
        _make_fused_kernel(n_layers, dot_dtype, precision),
        out_shape=jax.ShapeDtypeStruct((b_pad, cout_p), x.dtype),
        grid=(b_pad // tb,),
        in_specs=in_specs,
        out_specs=pl.BlockSpec((tb, cout_p), lambda i: (i, 0)),
        compiler_params=pltpu.CompilerParams(
            dimension_semantics=("parallel",),      # megacore sharding on v7x
            vmem_limit_bytes=int(min(budget, max(32 * MIB, 2 * needed)))),
        cost_estimate=pl.CostEstimate(flops=flops, transcendentals=0,
                                      bytes_accessed=bytes_accessed),
    )(*args)

    return out[:B, :cout]


# ----------------------------------------------------------------------------
# Init + pure-JAX reference
# ----------------------------------------------------------------------------
def init_params(key, in_channels, out_channels, n_layers=2):
    """Deterministic init mimicking nn.Linear's U(-1/sqrt(fan_in), 1/sqrt(fan_in))."""
    params = {}
    keys = jax.random.split(key, 2 * n_layers + 2)
    k = 0
    bound = 1.0 / jnp.sqrt(in_channels)
    for i in range(n_layers):
        params[f"lin{i}_w"] = jax.random.uniform(
            keys[k], (in_channels, in_channels), jnp.float32, -bound, bound); k += 1
        params[f"lin{i}_b"] = jax.random.uniform(
            keys[k], (in_channels,), jnp.float32, -bound, bound); k += 1
    params["out_w"] = jax.random.uniform(
        keys[k], (out_channels, in_channels), jnp.float32, -bound, bound); k += 1
    params["out_b"] = jax.random.uniform(
        keys[k], (out_channels,), jnp.float32, -bound, bound); k += 1
    return params


def mlp_reference(x, params, n_layers=2):
    """Pure-JAX reference matching the PyTorch forward (full-f32 matmuls)."""
    hp = jax.lax.Precision.HIGHEST
    h = x
    for i in range(n_layers):
        h = jnp.maximum(jnp.dot(h, params[f"lin{i}_w"].T, precision=hp)
                        + params[f"lin{i}_b"], 0.0)
    return jnp.dot(h, params["out_w"].T, precision=hp) + params["out_b"]


if __name__ == "__main__":
    key = jax.random.PRNGKey(0)
    k_x, k_p = jax.random.split(key)

    batch, in_channels, out_channels, n_layers = 8, 32, 16, 2
    x = jax.random.normal(k_x, (batch, in_channels), jnp.float32)
    params = init_params(k_p, in_channels, out_channels, n_layers=n_layers)
    y_ref = mlp_reference(x, params, n_layers=n_layers)

    # Default (performance) path: bf16 MXU operands, f32 accumulate.
    prepped_bf16 = prepare_params(params, n_layers=n_layers)
    y_bf16 = jax.block_until_ready(mlp_forward(x, prepped_bf16))
    assert y_bf16.shape == (batch, out_channels)
    assert jnp.allclose(y_bf16, y_ref, atol=5e-2, rtol=5e-2)

    # Exact-parity path: f32 operands with precision=HIGHEST.
    prepped_f32 = prepare_params(params, n_layers=n_layers, dot_dtype=jnp.float32)
    y_f32 = jax.block_until_ready(mlp_forward(x, prepped_f32))
    assert y_f32.shape == (batch, out_channels)
    assert jnp.allclose(y_f32, y_ref, atol=1e-4, rtol=1e-4)

    # Exercise the K/N-tiled fallback (auto-selected when resident weights
    # exceed the per-generation VMEM budget, e.g. very wide MLPs on v7x).
    y_tiled = jax.block_until_ready(_mlp_forward_tiled(x, prepped_f32))
    assert y_tiled.shape == (batch, out_channels)
    assert jnp.allclose(y_tiled, y_ref, atol=1e-4, rtol=1e-4)

    print("KERNEL_OK")
</pallas_src>

<mosaic_0001>
module attributes {stable_mosaic.version = 11 : i64} {
  func.func @kernel(%arg0: i32, %arg1: memref<8x32xf32, #tpu.memory_space<vmem>>, %arg2: memref<32x128xbf16, #tpu.memory_space<vmem>>, %arg3: memref<1x128xf32, #tpu.memory_space<vmem>>, %arg4: memref<128x128xbf16, #tpu.memory_space<vmem>>, %arg5: memref<1x128xf32, #tpu.memory_space<vmem>>, %arg6: memref<128x128xbf16, #tpu.memory_space<vmem>>, %arg7: memref<1x128xf32, #tpu.memory_space<vmem>>, %arg8: memref<8x128xf32, #tpu.memory_space<vmem>>) attributes {dimension_semantics = [#tpu.dimension_semantics<parallel>], iteration_bounds = array<i64: 1>, scalar_prefetch = 0 : i64, scratch_operands = 0 : i64, tpu.core_type = #tpu.core_type<tc>, window_params = [{transform_indices = @transform_0, window_bounds = array<i64: 8, 32>}, {pipeline_mode = #tpu.pipeline_mode<synchronous>, transform_indices = @transform_1, window_bounds = array<i64: 32, 128>}, {pipeline_mode = #tpu.pipeline_mode<synchronous>, transform_indices = @transform_2, window_bounds = array<i64: 1, 128>}, {pipeline_mode = #tpu.pipeline_mode<synchronous>, transform_indices = @transform_3, window_bounds = array<i64: 128, 128>}, {pipeline_mode = #tpu.pipeline_mode<synchronous>, transform_indices = @transform_4, window_bounds = array<i64: 1, 128>}, {pipeline_mode = #tpu.pipeline_mode<synchronous>, transform_indices = @transform_5, window_bounds = array<i64: 128, 128>}, {pipeline_mode = #tpu.pipeline_mode<synchronous>, transform_indices = @transform_6, window_bounds = array<i64: 1, 128>}, {transform_indices = @transform_7, window_bounds = array<i64: 8, 128>}]} {
    %c0 = arith.constant 0 : index
    %c0_0 = arith.constant 0 : index
    %0 = vector.load %arg1[%c0, %c0_0] : memref<8x32xf32, #tpu.memory_space<vmem>>, vector<8x32xf32>
    %1 = arith.truncf %0 : vector<8x32xf32> to vector<8x32xbf16>
    %c0_1 = arith.constant 0 : index
    %c0_2 = arith.constant 0 : index
    %2 = vector.load %arg2[%c0_1, %c0_2] : memref<32x128xbf16, #tpu.memory_space<vmem>>, vector<32x128xbf16>
    %cst = arith.constant dense<0.000000e+00> : vector<8x128xf32>
    %3 = tpu.matmul %1, %2, %cst {dimension_numbers = #tpu.dot_dimension_numbers<[1], [0], [0], [1], [0, 0, 1, 1], [], []>} : vector<8x32xbf16>, vector<32x128xbf16>, vector<8x128xf32> -> vector<8x128xf32>
    %c0_3 = arith.constant 0 : index
    %c0_4 = arith.constant 0 : index
    %4 = vector.load %arg3[%c0_3, %c0_4] : memref<1x128xf32, #tpu.memory_space<vmem>>, vector<1x128xf32>
    %5 = vector.broadcast %4 : vector<1x128xf32> to vector<8x128xf32>
    %6 = arith.addf %3, %5 : vector<8x128xf32>
    %cst_5 = arith.constant 0.000000e+00 : f32
    %7 = vector.broadcast %cst_5 : f32 to vector<8x128xf32>
    %8 = arith.maximumf %6, %7 : vector<8x128xf32>
    %9 = arith.truncf %8 : vector<8x128xf32> to vector<8x128xbf16>
    %c0_6 = arith.constant 0 : index
    %c0_7 = arith.constant 0 : index
    %10 = vector.load %arg4[%c0_6, %c0_7] : memref<128x128xbf16, #tpu.memory_space<vmem>>, vector<128x128xbf16>
    %cst_8 = arith.constant dense<0.000000e+00> : vector<8x128xf32>
    %11 = tpu.matmul %9, %10, %cst_8 {dimension_numbers = #tpu.dot_dimension_numbers<[1], [0], [0], [1], [0, 0, 1, 1], [], []>} : vector<8x128xbf16>, vector<128x128xbf16>, vector<8x128xf32> -> vector<8x128xf32>
    %c0_9 = arith.constant 0 : index
    %c0_10 = arith.constant 0 : index
    %12 = vector.load %arg5[%c0_9, %c0_10] : memref<1x128xf32, #tpu.memory_space<vmem>>, vector<1x128xf32>
    %13 = vector.broadcast %12 : vector<1x128xf32> to vector<8x128xf32>
    %14 = arith.addf %11, %13 : vector<8x128xf32>
    %cst_11 = arith.constant 0.000000e+00 : f32
    %15 = vector.broadcast %cst_11 : f32 to vector<8x128xf32>
    %16 = arith.maximumf %14, %15 : vector<8x128xf32>
    %17 = arith.truncf %16 : vector<8x128xf32> to vector<8x128xbf16>
    %c0_12 = arith.constant 0 : index
    %c0_13 = arith.constant 0 : index
    %18 = vector.load %arg6[%c0_12, %c0_13] : memref<128x128xbf16, #tpu.memory_space<vmem>>, vector<128x128xbf16>
    %cst_14 = arith.constant dense<0.000000e+00> : vector<8x128xf32>
    %19 = tpu.matmul %17, %18, %cst_14 {dimension_numbers = #tpu.dot_dimension_numbers<[1], [0], [0], [1], [0, 0, 1, 1], [], []>} : vector<8x128xbf16>, vector<128x128xbf16>, vector<8x128xf32> -> vector<8x128xf32>
    %c0_15 = arith.constant 0 : index
    %c0_16 = arith.constant 0 : index
    %20 = vector.load %arg7[%c0_15, %c0_16] : memref<1x128xf32, #tpu.memory_space<vmem>>, vector<1x128xf32>
    %21 = vector.broadcast %20 : vector<1x128xf32> to vector<8x128xf32>
    %22 = arith.addf %19, %21 : vector<8x128xf32>
    %c0_17 = arith.constant 0 : index
    %c0_18 = arith.constant 0 : index
    %23 = vector.load %arg8[%c0_17, %c0_18] : memref<8x128xf32, #tpu.memory_space<vmem>>, vector<8x128xf32>
    tpu.vector_store %arg8[%c0_17, %c0_18], %22 {strides = array<i32>} : memref<8x128xf32, #tpu.memory_space<vmem>>, vector<8x128xf32>,
    return
  }
  func.func @transform_0(%arg0: i32) -> (i32, i32) {
    %c0_i32 = arith.constant 0 : i32
    %c0_i32_0 = arith.constant 0 : i32
    return %arg0, %c0_i32 : i32, i32
  }
  func.func @transform_1(%arg0: i32) -> (i32, i32) {
    %c0_i32 = arith.constant 0 : i32
    %c0_i32_0 = arith.constant 0 : i32
    %c0_i32_1 = arith.constant 0 : i32
    return %c0_i32, %c0_i32_0 : i32, i32
  }
  func.func @transform_2(%arg0: i32) -> (i32, i32) {
    %c0_i32 = arith.constant 0 : i32
    %c0_i32_0 = arith.constant 0 : i32
    %c0_i32_1 = arith.constant 0 : i32
    return %c0_i32, %c0_i32_0 : i32, i32
  }
  func.func @transform_3(%arg0: i32) -> (i32, i32) {
    %c0_i32 = arith.constant 0 : i32
    %c0_i32_0 = arith.constant 0 : i32
    %c0_i32_1 = arith.constant 0 : i32
    return %c0_i32, %c0_i32_0 : i32, i32
  }
  func.func @transform_4(%arg0: i32) -> (i32, i32) {
    %c0_i32 = arith.constant 0 : i32
    %c0_i32_0 = arith.constant 0 : i32
    %c0_i32_1 = arith.constant 0 : i32
    return %c0_i32, %c0_i32_0 : i32, i32
  }
  func.func @transform_5(%arg0: i32) -> (i32, i32) {
    %c0_i32 = arith.constant 0 : i32
    %c0_i32_0 = arith.constant 0 : i32
    %c0_i32_1 = arith.constant 0 : i32
    return %c0_i32, %c0_i32_0 : i32, i32
  }
  func.func @transform_6(%arg0: i32) -> (i32, i32) {
    %c0_i32 = arith.constant 0 : i32
    %c0_i32_0 = arith.constant 0 : i32
    %c0_i32_1 = arith.constant 0 : i32
    return %c0_i32, %c0_i32_0 : i32, i32
  }
  func.func @transform_7(%arg0: i32) -> (i32, i32) {
    %c0_i32 = arith.constant 0 : i32
    %c0_i32_0 = arith.constant 0 : i32
    return %arg0, %c0_i32 : i32, i32
  }
}

</mosaic_0001>

<bundles_post_ra>
// kernel: tpu_custom_call.1
= control target key start
LH: loop header
LB: loop body
LE: loop exit
PB: predicated region body
PF: predicated region fallthrough
CT: control target
= control target key end

     0   :  { %12 = vsyncpa [#allocation3], 0  ;;  %s614_s0 = inlined_call_operand.hbm [shape: f32[8,32], index: 0, kind: input, shape index: {}]   ;;  %s615_s1 = inlined_call_operand.hbm [shape: bf16[32,128], index: 1, kind: input, shape index: {}]   ;;  %s616_s2 = inlined_call_operand.vmem [shape: f32[1,128], index: 2, kind: input, shape index: {}]   ;;  %s617_s3 = inlined_call_operand.hbm [shape: bf16[128,128], index: 3, kind: input, shape index: {}]   ;;  %s618_s4 = inlined_call_operand.vmem [shape: f32[1,128], index: 4, kind: input, shape index: {}]   ;;  %s619_s5 = inlined_call_operand.hbm [shape: bf16[128,128], index: 5, kind: input, shape index: {}]   ;;  %s620_s6 = inlined_call_operand.vmem [shape: f32[1,128], index: 6, kind: input, shape index: {}]   ;;  %s621_s7 = inlined_call_operand.hbm [shape: f32[8,128], index: 7, kind: output, shape index: {}]  }
   0x1   :  { %13 = vsyncpa [#allocation6], 0 }
   0x2   :  { %14 = vsyncpa [#allocation9], 0  ;;  %s31_s26 = sshll.u32 %s615_s1, 4  ;;  %s32_s26 = int_to_ptr.hbm [resolvable:$true] %s31_s26 }
   0x3   :  { %15 = vsyncpa [#allocation4], 0  ;;  %s543_s27 = smov [#allocation5]   ;;  %s21_s8 = sshll.u32 %s614_s0, 4  ;;  %s22_s8 = int_to_ptr.hbm [resolvable:$true] %s21_s8 }
   0x4   :  { %s33_s28 = sshll.u32 %s543_s27, 4  ;;  %s544_s9 = smov 64   ;;  %s34_s28 = int_to_ptr.vmem [resolvable:$true] %s33_s28 }
   0x5   :  { %s545_s10 = smov 4   ;;  %s546_s11 = smov [#allocation2]  }
   0x6   :  { %39 = dma.hbm_to_vmem [thread:$0]  %s32_s26, 256, %s34_s28, [#allocation6], %s544_s9, %s544_s9, %s545_s10  }
   0x7   :  { %s23_s12 = sshll.u32 %s546_s11, 4  ;;  %s46_s15 = sshll.u32 %s617_s3, 4  ;;  %s24_s12 = int_to_ptr.vmem [resolvable:$true] %s23_s12  ;;  %s47_s15 = int_to_ptr.hbm [resolvable:$true] %s46_s15 }
   0x8   :  { %26 = dma.hbm_to_vmem [thread:$0]  %s22_s8, 128, %s24_s12, [#allocation3]  }
   0x9   :  { %s61_s17 = sshll.u32 %s619_s5, 4  ;;  %s547_s18 = smov [#allocation7]   ;;  %s62_s17 = int_to_ptr.hbm [resolvable:$true] %s61_s17 }
   0xa   :  { %s48_s19 = sshll.u32 %s547_s18, 4  ;;  %s548_s0 = smov [#allocation8]   ;;  %s49_s19 = int_to_ptr.vmem [resolvable:$true] %s48_s19 }
   0xb   :  { %54 = dma.hbm_to_vmem [thread:$0]  %s47_s15, 1024, %s49_s19, [#allocation6], %s544_s9, %s544_s9, %s545_s10  }
   0xc   :  { %s63_s20 = sshll.u32 %s548_s0, 4  ;;  %s64_s20 = int_to_ptr.vmem [resolvable:$true] %s63_s20 }
   0xd   :  { %69 = dma.hbm_to_vmem [thread:$0]  %s62_s17, 1024, %s64_s20, [#allocation9], %s544_s9, %s544_s9, %s545_s10  }
   0xe   :  { %535 = dma.done.wait [#allocation3], 128  }
   0xf   :  { %536 = vsyncadd [#allocation3], 4294967168 }
  0x10   :  { %537 = dma.done.wait [#allocation6], 1280  }
  0x11   :  { %538 = vsyncadd [#allocation6], 4294966016 }
  0x12   :  { %539 = dma.done.wait [#allocation9], 1024  }
  0x13   :  { %540 = vsyncadd [#allocation9], 4294966272  ;;  %v388_v0 = vld [vmem:[#allocation5 + $0x8] sm:$0xff]  ;;  %v387_v2 = vld [vmem:[#allocation5] sm:$0xff]  ;;  %vm111_vm0 = vcmask 261120   ;;  %s549_s24 = smov [#allocation10]  }
  0x14   :  { %v396_v1 = vld [vmem:[#allocation7 + $0x38] sm:$0xff]  ;;  %121 = vmatpush.bf16.msra.mxu0 %v388_v0  ;;  %v89_v3 = vld [vmem:[#allocation2] sm:$0xff]  ;;  %v395_v4 = vld [vmem:[#allocation7 + $0x30] sm:$0xff]  ;;  %s300_s25 = sshll.u32 %s549_s24, 4  ;;  %s302_s28 = sshll.u32 %s621_s7, 4  ;;  %s301_s25 = int_to_ptr.vmem [resolvable:$true] %s300_s25  ;;  %s303_s28 = int_to_ptr.hbm [resolvable:$true] %s302_s28 }
  0x15   :  { %198 = vmatpush.bf16.msra.mxu1 %v396_v1  ;;  %v90_v5 = vpack.c.bf16 %v89_v3, %v89_v3  ;;  %v394_v6 = vld [vmem:[#allocation7 + $0x28] sm:$0xff]  ;;  %v393_v7 = vld [vmem:[#allocation7 + $0x20] sm:$0xff]  ;;  %v392_v8 = vld [vmem:[#allocation7 + $0x18] sm:$0xff] }
  0x16   :  { %v391_v9 = vld [vmem:[#allocation7 + $0x10] sm:$0xff]  ;;  %v390_v10 = vld [vmem:[#allocation7 + $0x8] sm:$0xff]  ;;  %v389_v11 = vld [vmem:[#allocation7] sm:$0xff] }
  0x17   :  { %v404_v12 = vld [vmem:[#allocation8 + $0x38] sm:$0xff]  ;;  %v403_v13 = vld [vmem:[#allocation8 + $0x30] sm:$0xff]  ;;  %v402_v14 = vld [vmem:[#allocation8 + $0x28] sm:$0xff] }
  0x18   :  { %122 = vmatpush.bf16.msra.mxu0 %v387_v2  ;;  %281 = vmatpush.bf16.msra.mxu2 %v404_v12  ;;  %v401_v15 = vld [vmem:[#allocation8 + $0x20] sm:$0xff]  ;;  %v400_v16 = vld [vmem:[#allocation8 + $0x18] sm:$0xff]  ;;  %v399_v17 = vld [vmem:[#allocation8 + $0x10] sm:$0xff] }
  0x19   :  { %199 = vmatpush.bf16.msra.mxu1 %v395_v4  ;;  %v412_v18 = vld [vmem:[%s616_s2] ss:$0 sm:$0xff]  ;;  %v397_v25 = vld [vmem:[#allocation8] sm:$0xff] }
  0x1a   :  { %v398_v24 = vld [vmem:[#allocation8 + $0x8] sm:$0xff] }
  0x1b   :  { %322 = vmatmul.msk.bf16.vlgmr.msra.gmra.mxu0 %vm111_vm0, %v90_v5  ;;  %v413_v26 = vld [vmem:[%s618_s4] ss:$0 sm:$0xff] }
  0x1c   :  { %282 = vmatpush.bf16.msra.mxu2 %v403_v13  ;;  %v414_v32 = vld [vmem:[%s620_s6] ss:$0 sm:$0xff] }
  0x1d   :  { %200 = vmatpush.bf16.msra.mxu1 %v394_v6 }
  0x20   :  { %283 = vmatpush.bf16.msra.mxu2 %v402_v14 }
  0x21   :  { %201 = vmatpush.bf16.msra.mxu1 %v393_v7 }
  0x24   :  { %284 = vmatpush.bf16.msra.mxu2 %v401_v15 }
  0x25   :  { %202 = vmatpush.bf16.msra.mxu1 %v392_v8 }
  0x28   :  { %285 = vmatpush.bf16.msra.mxu2 %v400_v16 }
  0x29   :  { %203 = vmatpush.bf16.msra.mxu1 %v391_v9 }
  0x2c   :  { %286 = vmatpush.bf16.msra.mxu2 %v399_v17 }
  0x2d   :  { %204 = vmatpush.bf16.msra.mxu1 %v390_v10 }
  0x30   :  { %287 = vmatpush.bf16.msra.mxu2 %v398_v24 }
  0x31   :  { %205 = vmatpush.bf16.msra.mxu1 %v389_v11 }
  0x34   :  { %288 = vmatpush.bf16.msra.mxu2 %v397_v25 }
  0x98   :  { %v124_v19 = vpop.f32.mrf.mxu0 }
  0x99   :  { %v125_v20 = vadd.f32 %v412_v18, %v124_v19 }
  0x9b   :  { %v128_v21 = vmax.f32 %v125_v20, 0.0 }
  0x9d   :  { %v129_v22 = vpack.c.bf16 %v128_v21, %v128_v21 }
  0x9f   :  { %206 = vmatmul.bf16.vlgmr.msra.gmra.mxu1 %v129_v22 }
  0xa0   :  { %v126_v23 = vpop.f32.mrf.mxu0 }
 0x11c   :  { %v207_v27 = vpop.f32.mrf.mxu1 }
 0x11d   :  { %v208_v28 = vadd.f32 %v413_v26, %v207_v27 }
 0x11f   :  { %v211_v29 = vmax.f32 %v208_v28, 0.0 }
 0x121   :  { %v212_v30 = vpack.c.bf16 %v211_v29, %v211_v29 }
 0x123   :  { %289 = vmatmul.bf16.vlgmr.msra.gmra.mxu2 %v212_v30 }
 0x124   :  { %v209_v31 = vpop.f32.mrf.mxu1 }
 0x1a6   :  { %v290_v33 = vpop.f32.mrf.mxu2 }
 0x1a7   :  { %v291_v34 = vadd.f32 %v414_v32, %v290_v33 }
 0x1a9   :  { %294 = vst [vmem:[#allocation10] sm:$0xff] %v291_v34 }
 0x1aa   :  { %305 = dma.vmem_to_hbm [thread:$0]  %s301_s25, 128, %s303_s28, [#allocation4]  }
 0x1ae   :  { %v292_v35 = vpop.f32.mrf.mxu2 }
 0x1af   :  { %541 = dma.done.wait [#allocation4], 128  }
 0x1b0   :  { %542 = vsyncadd [#allocation4], 4294967168 }
 0x1b1   :  { %310 = vsyncpa [#allocation3], 1 }
 0x1b2   :  { %311 = vsyncpa [#allocation6], 1 }
 0x1b3   :  { %312 = vsyncpa [#allocation9], 1 }
 0x1b4   :  { %313 = vsyncpa [#allocation4], 1 }

</bundles_post_ra>
